<compile_context>
chip_gen: v7x
topology: tpu7x:2x2x1
jax: 0.10.0
libtpu: 0.0.40
codegen_flags: <defaults>
</compile_context>

<pallas_src>
import math
import functools

import numpy as np
import jax
import jax.numpy as jnp
from jax import lax
from jax.experimental import pallas as pl
from jax.experimental.pallas import tpu as pltpu


def _mha_kernel(xq_ref, xkv_ref, bias_ref, wq_ref, wk_ref, wv_ref, wo_ref,
                bfc_ref, o_ref, acc_ref, *, n_head):
    h = pl.program_id(2)

    @pl.when(h == 0)
    def _init():
        # Fold the fc bias into the accumulator initialization.
        acc_ref[...] = jnp.broadcast_to(bfc_ref[...], acc_ref.shape)

    xq = xq_ref[0]          # (TQ, D)  bf16
    xkv = xkv_ref[0]        # (L,  D)  bf16
    bias = bias_ref[0]      # (1,  L)  f32 additive key bias (0 or -1e30)

    wq = wq_ref[0]          # (D, hd)  bf16, 1/scale already folded in
    wk = wk_ref[0]          # (D, hd)  bf16
    wv = wv_ref[0]          # (D, hd)  bf16
    wo = wo_ref[0]          # (hd, D)  bf16

    # Per-head projections (bf16 operands, f32 accumulation on the MXU).
    qh = jnp.dot(xq, wq, preferred_element_type=jnp.float32)    # (TQ, hd)
    kh = jnp.dot(xkv, wk, preferred_element_type=jnp.float32)   # (L, hd)
    vh = jnp.dot(xkv, wv, preferred_element_type=jnp.float32)   # (L, hd)

    # scores = q @ k^T expressed as a last-axis contraction (no transpose).
    scores = lax.dot_general(
        qh.astype(jnp.bfloat16), kh.astype(jnp.bfloat16),
        dimension_numbers=(((1,), (1,)), ((), ())),
        preferred_element_type=jnp.float32)                     # (TQ, L)
    scores = scores + bias                                      # masked keys

    # Softmax over keys; reciprocal on the EUP instead of a vector divide.
    m = jnp.max(scores, axis=-1, keepdims=True)
    p = jnp.exp(scores - m)
    denom = jnp.sum(p, axis=-1, keepdims=True)
    attn = p * pl.reciprocal(denom, approx=True)

    # TODO(synk): attention dropout from the PyTorch module is identity here
    # (inference / eval mode).

    ctx = jnp.dot(attn.astype(jnp.bfloat16), vh.astype(jnp.bfloat16),
                  preferred_element_type=jnp.float32)           # (TQ, hd)

    # Accumulate this head's slice of the output projection.
    acc_ref[...] += jnp.dot(ctx.astype(jnp.bfloat16), wo,
                            preferred_element_type=jnp.float32)  # (TQ, D)

    @pl.when(h == n_head - 1)
    def _finalize():
        o_ref[0] = acc_ref[...].astype(o_ref.dtype)


def multi_head_attn(x, mask, w_qkv_t, w_fc_t, b_fc, *, n_head, scale,
                    block_q=256):
    """x: (B, L, D) f32; mask: (B, L) {0,1}. Returns (B, L, D) f32.

    w_qkv_t: (D, 3D) = PyTorch qkv_linear.weight.T
    w_fc_t : (D, D)  = PyTorch fc.weight.T
    b_fc   : (D,)    = PyTorch fc.bias
    """
    B, L, D = x.shape
    assert D % n_head == 0
    hd = D // n_head

    # Additive key bias (0 keep / -1e30 masked), computed once outside kernel.
    bias = jnp.where(mask[:, None, :] == 0,
                     jnp.float32(-1e30), jnp.float32(0.0))       # (B, 1, L)

    # Per-head weight layouts; fold 1/scale into W_q before the bf16 cast.
    wq_t, wk_t, wv_t = jnp.split(w_qkv_t, 3, axis=-1)            # each (D, D)
    wq_t = wq_t / jnp.float32(scale)

    def per_head(w):                                             # (D,D)->(H,D,hd)
        return w.reshape(D, n_head, hd).transpose(1, 0, 2)

    wq_h = per_head(wq_t).astype(jnp.bfloat16)
    wk_h = per_head(wk_t).astype(jnp.bfloat16)
    wv_h = per_head(wv_t).astype(jnp.bfloat16)
    wo_h = w_fc_t.reshape(n_head, hd, D).astype(jnp.bfloat16)    # (H, hd, D)
    bfc2 = b_fc.reshape(1, D).astype(jnp.float32)

    x_bf = x.astype(jnp.bfloat16)

    # Query tile size (falls back to full L if it doesn't divide evenly).
    tq = block_q if (block_q <= L and L % block_q == 0) else L
    grid = (B, L // tq, n_head)

    kernel = functools.partial(_mha_kernel, n_head=n_head)

    return pl.pallas_call(
        kernel,
        out_shape=jax.ShapeDtypeStruct((B, L, D), jnp.float32),
        grid_spec=pltpu.PrefetchScalarGridSpec(
            num_scalar_prefetch=0,
            grid=grid,
            in_specs=[
                pl.BlockSpec((1, tq, D), lambda b, q, h: (b, q, 0)),   # x (queries)
                pl.BlockSpec((1, L, D), lambda b, q, h: (b, 0, 0)),    # x (keys/values)
                pl.BlockSpec((1, 1, L), lambda b, q, h: (b, 0, 0)),    # additive mask bias
                pl.BlockSpec((1, D, hd), lambda b, q, h: (h, 0, 0)),   # W_q[h] (scaled)
                pl.BlockSpec((1, D, hd), lambda b, q, h: (h, 0, 0)),   # W_k[h]
                pl.BlockSpec((1, D, hd), lambda b, q, h: (h, 0, 0)),   # W_v[h]
                pl.BlockSpec((1, hd, D), lambda b, q, h: (h, 0, 0)),   # W_fc^T[h]
                pl.BlockSpec((1, D), lambda b, q, h: (0, 0)),          # b_fc
            ],
            out_specs=pl.BlockSpec((1, tq, D), lambda b, q, h: (b, q, 0)),
            scratch_shapes=[pltpu.VMEM((tq, D), jnp.float32)],
        ),
        compiler_params=pltpu.CompilerParams(
            dimension_semantics=("parallel", "parallel", "arbitrary"),
            vmem_limit_bytes=64 * 1024 * 1024,
        ),
    )(x_bf, x_bf, bias, wq_h, wk_h, wv_h, wo_h, bfc2)


def _reference(x, mask, w_qkv_t, w_fc_t, b_fc, *, n_head, scale):
    """Pure-JAX f32 mirror of the PyTorch forward (eval mode, no dropout)."""
    B, L, D = x.shape
    hd = D // n_head
    qkv = x @ w_qkv_t                                            # (B, L, 3D)
    q, k, v = jnp.split(qkv, 3, axis=-1)
    q = q.reshape(B, L, n_head, hd).transpose(0, 2, 1, 3)        # (B, H, L, hd)
    k = k.reshape(B, L, n_head, hd).transpose(0, 2, 3, 1)        # (B, H, hd, L)
    v = v.reshape(B, L, n_head, hd).transpose(0, 2, 1, 3)        # (B, H, L, hd)
    attn = jnp.matmul(q, k) / scale                              # (B, H, L, L)
    attn = jnp.where(mask[:, None, None, :] == 0, -jnp.inf, attn)
    attn = jax.nn.softmax(attn, axis=-1)
    o = jnp.matmul(attn, v)                                      # (B, H, L, hd)
    o = o.transpose(0, 2, 1, 3).reshape(B, L, D)
    return o @ w_fc_t + b_fc[None, None, :]


if __name__ == "__main__":
    B, L, D, H = 2, 8, 32, 4
    use_scale = True
    scale = math.sqrt(D // H) if use_scale else 1.0

    key = jax.random.PRNGKey(0)
    kx, kq, kf, kb = jax.random.split(key, 4)

    x = jax.random.normal(kx, (B, L, D), dtype=jnp.float32)
    # mask: 1 = valid token, 0 = padding (at least one valid key per row)
    lengths = jnp.array([8, 5], dtype=jnp.int32)
    mask = (jnp.arange(L)[None, :] < lengths[:, None]).astype(jnp.int32)

    # Deterministic parameter init (shapes from MultiHeadAttn.__init__),
    # stored pre-transposed for the kernel.
    w_qkv_t = jax.random.normal(kq, (D, 3 * D), dtype=jnp.float32) * (1.0 / math.sqrt(D))
    w_fc_t = jax.random.normal(kf, (D, D), dtype=jnp.float32) * (1.0 / math.sqrt(D))
    b_fc = jax.random.normal(kb, (D,), dtype=jnp.float32) * 0.01

    out = multi_head_attn(x, mask, w_qkv_t, w_fc_t, b_fc, n_head=H, scale=scale)
    out = jax.block_until_ready(out)

    ref = _reference(x, mask, w_qkv_t, w_fc_t, b_fc, n_head=H, scale=scale)
    # bf16 MXU operands + approximate reciprocal -> compare at bf16-level tolerance.
    np.testing.assert_allclose(np.asarray(out), np.asarray(ref), rtol=3e-2, atol=3e-2)

    print("KERNEL_OK")
</pallas_src>

<mosaic_0001>
module attributes {stable_mosaic.version = 11 : i64} {
  func.func @_mha_kernel(%arg0: i32, %arg1: i32, %arg2: i32, %arg3: memref<1x8x32xbf16, #tpu.memory_space<vmem>>, %arg4: memref<1x8x32xbf16, #tpu.memory_space<vmem>>, %arg5: memref<1x1x8xf32, #tpu.memory_space<vmem>>, %arg6: memref<1x32x8xbf16, #tpu.memory_space<vmem>>, %arg7: memref<1x32x8xbf16, #tpu.memory_space<vmem>>, %arg8: memref<1x32x8xbf16, #tpu.memory_space<vmem>>, %arg9: memref<1x8x32xbf16, #tpu.memory_space<vmem>>, %arg10: memref<1x32xf32, #tpu.memory_space<vmem>>, %arg11: memref<1x8x32xf32, #tpu.memory_space<vmem>>, %arg12: memref<8x32xf32, #tpu.memory_space<vmem>>) attributes {dimension_semantics = [#tpu.dimension_semantics<parallel>, #tpu.dimension_semantics<parallel>, #tpu.dimension_semantics<arbitrary>], iteration_bounds = array<i64: 2, 1, 4>, scalar_prefetch = 0 : i64, scratch_operands = 1 : i64, tpu.core_type = #tpu.core_type<tc>, window_params = [{transform_indices = @transform_0, window_bounds = array<i64: 1, 8, 32>}, {transform_indices = @transform_1, window_bounds = array<i64: 1, 8, 32>}, {transform_indices = @transform_2, window_bounds = array<i64: 1, 1, 8>}, {transform_indices = @transform_3, window_bounds = array<i64: 1, 32, 8>}, {transform_indices = @transform_4, window_bounds = array<i64: 1, 32, 8>}, {transform_indices = @transform_5, window_bounds = array<i64: 1, 32, 8>}, {transform_indices = @transform_6, window_bounds = array<i64: 1, 8, 32>}, {pipeline_mode = #tpu.pipeline_mode<synchronous>, transform_indices = @transform_7, window_bounds = array<i64: 1, 32>}, {transform_indices = @transform_8, window_bounds = array<i64: 1, 8, 32>}]} {
    %c0_i32 = arith.constant 0 : i32
    %0 = arith.cmpi eq, %arg2, %c0_i32 : i32
    %1 = arith.extui %0 : i1 to i32
    %c0_i32_0 = arith.constant 0 : i32
    %2 = arith.cmpi ne, %1, %c0_i32_0 : i32
    scf.if %2 {
      %c0_33 = arith.constant 0 : index
      %c0_34 = arith.constant 0 : index
      %46 = vector.load %arg10[%c0_33, %c0_34] : memref<1x32xf32, #tpu.memory_space<vmem>>, vector<1x32xf32>
      %47 = vector.shape_cast %46 : vector<1x32xf32> to vector<1x32xf32>
      %48 = vector.broadcast %47 : vector<1x32xf32> to vector<8x32xf32>
      %c0_35 = arith.constant 0 : index
      %c0_36 = arith.constant 0 : index
      %49 = vector.load %arg12[%c0_35, %c0_36] : memref<8x32xf32, #tpu.memory_space<vmem>>, vector<8x32xf32>
      tpu.vector_store %arg12[%c0_35, %c0_36], %48 {strides = array<i32>} : memref<8x32xf32, #tpu.memory_space<vmem>>, vector<8x32xf32>,
    } else {
    }
    %c0 = arith.constant 0 : index
    %c0_1 = arith.constant 0 : index
    %c0_2 = arith.constant 0 : index
    %3 = vector.load %arg3[%c0, %c0_1, %c0_2] : memref<1x8x32xbf16, #tpu.memory_space<vmem>>, vector<1x8x32xbf16>
    %4 = vector.shape_cast %3 : vector<1x8x32xbf16> to vector<8x32xbf16>
    %c0_3 = arith.constant 0 : index
    %c0_4 = arith.constant 0 : index
    %c0_5 = arith.constant 0 : index
    %5 = vector.load %arg4[%c0_3, %c0_4, %c0_5] : memref<1x8x32xbf16, #tpu.memory_space<vmem>>, vector<1x8x32xbf16>
    %6 = vector.shape_cast %5 : vector<1x8x32xbf16> to vector<8x32xbf16>
    %c0_6 = arith.constant 0 : index
    %c0_7 = arith.constant 0 : index
    %c0_8 = arith.constant 0 : index
    %7 = vector.load %arg5[%c0_6, %c0_7, %c0_8] : memref<1x1x8xf32, #tpu.memory_space<vmem>>, vector<1x1x8xf32>
    %8 = vector.shape_cast %7 : vector<1x1x8xf32> to vector<1x8xf32>
    %c0_9 = arith.constant 0 : index
    %c0_10 = arith.constant 0 : index
    %c0_11 = arith.constant 0 : index
    %9 = vector.load %arg6[%c0_9, %c0_10, %c0_11] : memref<1x32x8xbf16, #tpu.memory_space<vmem>>, vector<1x32x8xbf16>
    %10 = vector.shape_cast %9 : vector<1x32x8xbf16> to vector<32x8xbf16>
    %c0_12 = arith.constant 0 : index
    %c0_13 = arith.constant 0 : index
    %c0_14 = arith.constant 0 : index
    %11 = vector.load %arg7[%c0_12, %c0_13, %c0_14] : memref<1x32x8xbf16, #tpu.memory_space<vmem>>, vector<1x32x8xbf16>
    %12 = vector.shape_cast %11 : vector<1x32x8xbf16> to vector<32x8xbf16>
    %c0_15 = arith.constant 0 : index
    %c0_16 = arith.constant 0 : index
    %c0_17 = arith.constant 0 : index
    %13 = vector.load %arg8[%c0_15, %c0_16, %c0_17] : memref<1x32x8xbf16, #tpu.memory_space<vmem>>, vector<1x32x8xbf16>
    %14 = vector.shape_cast %13 : vector<1x32x8xbf16> to vector<32x8xbf16>
    %c0_18 = arith.constant 0 : index
    %c0_19 = arith.constant 0 : index
    %c0_20 = arith.constant 0 : index
    %15 = vector.load %arg9[%c0_18, %c0_19, %c0_20] : memref<1x8x32xbf16, #tpu.memory_space<vmem>>, vector<1x8x32xbf16>
    %16 = vector.shape_cast %15 : vector<1x8x32xbf16> to vector<8x32xbf16>
    %cst = arith.constant dense<0.000000e+00> : vector<8x8xf32>
    %17 = tpu.matmul %4, %10, %cst {dimension_numbers = #tpu.dot_dimension_numbers<[1], [0], [0], [1], [0, 0, 1, 1], [], []>} : vector<8x32xbf16>, vector<32x8xbf16>, vector<8x8xf32> -> vector<8x8xf32>
    %cst_21 = arith.constant dense<0.000000e+00> : vector<8x8xf32>
    %18 = tpu.matmul %6, %12, %cst_21 {dimension_numbers = #tpu.dot_dimension_numbers<[1], [0], [0], [1], [0, 0, 1, 1], [], []>} : vector<8x32xbf16>, vector<32x8xbf16>, vector<8x8xf32> -> vector<8x8xf32>
    %cst_22 = arith.constant dense<0.000000e+00> : vector<8x8xf32>
    %19 = tpu.matmul %6, %14, %cst_22 {dimension_numbers = #tpu.dot_dimension_numbers<[1], [0], [0], [1], [0, 0, 1, 1], [], []>} : vector<8x32xbf16>, vector<32x8xbf16>, vector<8x8xf32> -> vector<8x8xf32>
    %20 = arith.truncf %17 : vector<8x8xf32> to vector<8x8xbf16>
    %21 = arith.truncf %18 : vector<8x8xf32> to vector<8x8xbf16>
    %cst_23 = arith.constant dense<0.000000e+00> : vector<8x8xf32>
    %22 = tpu.matmul %20, %21, %cst_23 {dimension_numbers = #tpu.dot_dimension_numbers<[1], [1], [0], [0], [0, 0, 1, 0], [], []>} : vector<8x8xbf16>, vector<8x8xbf16>, vector<8x8xf32> -> vector<8x8xf32>
    %23 = vector.broadcast %8 : vector<1x8xf32> to vector<8x8xf32>
    %24 = arith.addf %22, %23 : vector<8x8xf32>
    %cst_24 = arith.constant dense<0xFF800000> : vector<8xf32>
    %25 = vector.multi_reduction <maximumf>, %24, %cst_24 [1] : vector<8x8xf32> to vector<8xf32>
    %26 = vector.shape_cast %25 : vector<8xf32> to vector<8x1xf32>
    %27 = vector.broadcast %26 : vector<8x1xf32> to vector<8x8xf32>
    %28 = arith.subf %24, %27 : vector<8x8xf32>
    %29 = math.exp %28 : vector<8x8xf32>
    %cst_25 = arith.constant dense<0.000000e+00> : vector<8xf32>
    %30 = vector.multi_reduction <add>, %29, %cst_25 [1] : vector<8x8xf32> to vector<8xf32>
    %31 = vector.shape_cast %30 : vector<8xf32> to vector<8x1xf32>
    %32 = tpu.reciprocal %31 {approx = true} : vector<8x1xf32> -> vector<8x1xf32>
    %33 = vector.broadcast %32 : vector<8x1xf32> to vector<8x8xf32>
    %34 = arith.mulf %29, %33 : vector<8x8xf32>
    %35 = arith.truncf %34 : vector<8x8xf32> to vector<8x8xbf16>
    %36 = arith.truncf %19 : vector<8x8xf32> to vector<8x8xbf16>
    %cst_26 = arith.constant dense<0.000000e+00> : vector<8x8xf32>
    %37 = tpu.matmul %35, %36, %cst_26 {dimension_numbers = #tpu.dot_dimension_numbers<[1], [0], [0], [1], [0, 0, 1, 1], [], []>} : vector<8x8xbf16>, vector<8x8xbf16>, vector<8x8xf32> -> vector<8x8xf32>
    %c0_27 = arith.constant 0 : index
    %c0_28 = arith.constant 0 : index
    %38 = vector.load %arg12[%c0_27, %c0_28] : memref<8x32xf32, #tpu.memory_space<vmem>>, vector<8x32xf32>
    %39 = arith.truncf %37 : vector<8x8xf32> to vector<8x8xbf16>
    %cst_29 = arith.constant dense<0.000000e+00> : vector<8x32xf32>
    %40 = tpu.matmul %39, %16, %cst_29 {dimension_numbers = #tpu.dot_dimension_numbers<[1], [0], [0], [1], [0, 0, 1, 1], [], []>} : vector<8x8xbf16>, vector<8x32xbf16>, vector<8x32xf32> -> vector<8x32xf32>
    %41 = arith.addf %38, %40 : vector<8x32xf32>
    %c0_30 = arith.constant 0 : index
    %c0_31 = arith.constant 0 : index
    %42 = vector.load %arg12[%c0_30, %c0_31] : memref<8x32xf32, #tpu.memory_space<vmem>>, vector<8x32xf32>
    tpu.vector_store %arg12[%c0_30, %c0_31], %41 {strides = array<i32>} : memref<8x32xf32, #tpu.memory_space<vmem>>, vector<8x32xf32>,
    %c3_i32 = arith.constant 3 : i32
    %43 = arith.cmpi eq, %arg2, %c3_i32 : i32
    %44 = arith.extui %43 : i1 to i32
    %c0_i32_32 = arith.constant 0 : i32
    %45 = arith.cmpi ne, %44, %c0_i32_32 : i32
    scf.if %45 {
      %c0_33 = arith.constant 0 : index
      %c0_34 = arith.constant 0 : index
      %46 = vector.load %arg12[%c0_33, %c0_34] : memref<8x32xf32, #tpu.memory_space<vmem>>, vector<8x32xf32>
      %c0_35 = arith.constant 0 : index
      %c0_36 = arith.constant 0 : index
      %c0_37 = arith.constant 0 : index
      %47 = vector.load %arg11[%c0_35, %c0_36, %c0_37] : memref<1x8x32xf32, #tpu.memory_space<vmem>>, vector<1x8x32xf32>
      %48 = vector.shape_cast %47 : vector<1x8x32xf32> to vector<8x32xf32>
      %49 = vector.shape_cast %46 : vector<8x32xf32> to vector<1x8x32xf32>
      tpu.vector_store %arg11[%c0_35, %c0_36, %c0_37], %49 {strides = array<i32>} : memref<1x8x32xf32, #tpu.memory_space<vmem>>, vector<1x8x32xf32>,
    } else {
    }
    return
  }
  func.func @transform_0(%arg0: i32, %arg1: i32, %arg2: i32) -> (i32, i32, i32) {
    %c0_i32 = arith.constant 0 : i32
    %c0_i32_0 = arith.constant 0 : i32
    return %arg0, %arg1, %c0_i32 : i32, i32, i32
  }
  func.func @transform_1(%arg0: i32, %arg1: i32, %arg2: i32) -> (i32, i32, i32) {
    %c0_i32 = arith.constant 0 : i32
    %c0_i32_0 = arith.constant 0 : i32
    %c0_i32_1 = arith.constant 0 : i32
    return %arg0, %c0_i32, %c0_i32_0 : i32, i32, i32
  }
  func.func @transform_2(%arg0: i32, %arg1: i32, %arg2: i32) -> (i32, i32, i32) {
    %c0_i32 = arith.constant 0 : i32
    %c0_i32_0 = arith.constant 0 : i32
    %c0_i32_1 = arith.constant 0 : i32
    return %arg0, %c0_i32, %c0_i32_0 : i32, i32, i32
  }
  func.func @transform_3(%arg0: i32, %arg1: i32, %arg2: i32) -> (i32, i32, i32) {
    %c0_i32 = arith.constant 0 : i32
    %c0_i32_0 = arith.constant 0 : i32
    %c0_i32_1 = arith.constant 0 : i32
    return %arg2, %c0_i32, %c0_i32_0 : i32, i32, i32
  }
  func.func @transform_4(%arg0: i32, %arg1: i32, %arg2: i32) -> (i32, i32, i32) {
    %c0_i32 = arith.constant 0 : i32
    %c0_i32_0 = arith.constant 0 : i32
    %c0_i32_1 = arith.constant 0 : i32
    return %arg2, %c0_i32, %c0_i32_0 : i32, i32, i32
  }
  func.func @transform_5(%arg0: i32, %arg1: i32, %arg2: i32) -> (i32, i32, i32) {
    %c0_i32 = arith.constant 0 : i32
    %c0_i32_0 = arith.constant 0 : i32
    %c0_i32_1 = arith.constant 0 : i32
    return %arg2, %c0_i32, %c0_i32_0 : i32, i32, i32
  }
  func.func @transform_6(%arg0: i32, %arg1: i32, %arg2: i32) -> (i32, i32, i32) {
    %c0_i32 = arith.constant 0 : i32
    %c0_i32_0 = arith.constant 0 : i32
    %c0_i32_1 = arith.constant 0 : i32
    return %arg2, %c0_i32, %c0_i32_0 : i32, i32, i32
  }
  func.func @transform_7(%arg0: i32, %arg1: i32, %arg2: i32) -> (i32, i32) {
    %c0_i32 = arith.constant 0 : i32
    %c0_i32_0 = arith.constant 0 : i32
    %c0_i32_1 = arith.constant 0 : i32
    return %c0_i32, %c0_i32_0 : i32, i32
  }
  func.func @transform_8(%arg0: i32, %arg1: i32, %arg2: i32) -> (i32, i32, i32) {
    %c0_i32 = arith.constant 0 : i32
    %c0_i32_0 = arith.constant 0 : i32
    return %arg0, %arg1, %c0_i32 : i32, i32, i32
  }
}

</mosaic_0001>

<bundles_post_ra>
// kernel: tpu_custom_call.1
= control target key start
LH: loop header
LB: loop body
LE: loop exit
PB: predicated region body
PF: predicated region fallthrough
CT: control target
= control target key end

     0   :  { %s2445_s0 = inlined_call_operand.hbm [shape: bf16[2,8,32], index: 0, kind: input, shape index: {}]   ;;  %s2446_s1 = inlined_call_operand.hbm [shape: bf16[2,8,32], index: 1, kind: input, shape index: {}]   ;;  %s2447_s2 = inlined_call_operand.hbm [shape: f32[2,1,8], index: 2, kind: input, shape index: {}]   ;;  %s2448_s3 = inlined_call_operand.hbm [shape: bf16[4,32,8], index: 3, kind: input, shape index: {}]   ;;  %s2449_s4 = inlined_call_operand.hbm [shape: bf16[4,32,8], index: 4, kind: input, shape index: {}]   ;;  %s2450_s5 = inlined_call_operand.hbm [shape: bf16[4,32,8], index: 5, kind: input, shape index: {}]   ;;  %s2451_s6 = inlined_call_operand.hbm [shape: bf16[4,8,32], index: 6, kind: input, shape index: {}]   ;;  %s2452_s7 = inlined_call_operand.hbm [shape: f32[1,32], index: 7, kind: input, shape index: {}]   ;;  %s2453_s8 = inlined_call_operand.hbm [shape: f32[2,8,32], index: 8, kind: output, shape index: {}]  }
   0x1   :  { %2497 = sst [smem:[#allocation38_spill]] %s2445_s0 }
   0x2   :  { %2498 = sst [smem:[#allocation39_spill]] %s2446_s1 }
   0x3   :  { %2499 = sst [smem:[#allocation40_spill]] %s2447_s2 }
   0x4   :  { %2500 = sst [smem:[#allocation41_spill]] %s2448_s3 }
   0x5   :  { %2501 = sst [smem:[#allocation42_spill]] %s2449_s4 }
   0x6   :  { %2502 = sst [smem:[#allocation43_spill]] %s2450_s5 }
   0x7   :  { %2503 = sst [smem:[#allocation44_spill]] %s2451_s6 }
   0x8   :  { %2504 = sst [smem:[#allocation45_spill]] %s2452_s7 }
   0x9   :  { %2505 = sst [smem:[#allocation46_spill]] %s2453_s8 }
   0xa   :  { %13 = vsyncpa [#allocation4], 0 }
   0xb   :  { %15 = vsyncpa [#allocation4 + $0x1], 0 }
   0xc   :  { %16 = vsyncpa [#allocation7], 0 }
   0xd   :  { %18 = vsyncpa [#allocation7 + $0x1], 0 }
   0xe   :  { %19 = vsyncpa [#allocation10], 0 }
   0xf   :  { %21 = vsyncpa [#allocation10 + $0x1], 0 }
  0x10   :  { %22 = vsyncpa [#allocation13], 0 }
  0x11   :  { %24 = vsyncpa [#allocation13 + $0x1], 0 }
  0x12   :  { %25 = vsyncpa [#allocation16], 0 }
  0x13   :  { %26 = vsyncpa [#allocation5], 0 }
  0x14   :  { %28 = vsyncpa [#allocation5 + $0x1], 0  ;;  %s1881_s27 = smov 0   ;;  %s1883_s28 = smov 0  }
  0x15   :  { %s1885_s29 = smov 0   ;;  %s1887_s30 = smov 0  }
  0x16   :  { %s1889_s9 = smov 0   ;;  %s1891_s10 = smov 0  }
  0x17   :  { %s1893_s11 = smov 0   ;;  %s1895_s12 = smov 0  }
  0x18   :  { %s1897_s13 = smov 0   ;;  %s1899_s14 = smov 0  }
  0x19   :  { %s1901_s15 = smov 0  }
  0x1a LB: > { %2506 = sst [smem:[#allocation24_spill]] %s1789_s29  ;;  %p2457_p0 = scmp.ne.s32.totalorder %s1801_s10, %s1797_s9  ;;  %s1821_s15 = sphi %s1901_s15, %s34_s15   ;;  %s1817_s14 = sphi %s1899_s14, %s2597_s14   ;;  %s1813_s13 = sphi %s1897_s13, %s2590_s13   ;;  %s1809_s12 = sphi %s1895_s12, %s2596_s12   ;;  %s1805_s11 = sphi %s1893_s11, %s2589_s11   ;;  %s1801_s10 = sphi %s1891_s10, %s2588_s10   ;;  %s1797_s9 = sphi %s1889_s9, %s2595_s9   ;;  %s1793_s30 = sphi %s1887_s30, %s2594_s30   ;;  %s1789_s29 = sphi %s1885_s29, %s2586_s29   ;;  %s1785_s28 = sphi %s1883_s28, %s2593_s28   ;;  %s1781_s27 = sphi %s1881_s27, %s2592_s27  }
  0x1b   : > { %2507 = sst [smem:[#allocation25_spill]] %s1793_s30  ;;  %p70_p1 = scmp.eq.s32.totalorder %s1821_s15, 0 }
  0x1c   : > { %2508 = sst [smem:[#allocation26_spill]] %s1801_s10  ;;  %p147_p2 = scmp.ne.s32.totalorder %s1789_s29, %s1785_s28 }
  0x1d   : > { %2509 = sst [smem:[#allocation27_spill]] %s1805_s11  ;;  %p71_p3 = por %p70_p1, %p2457_p0 }
  0x1e   : > { %2510 = sst [smem:[#allocation28_spill]] %s1809_s12  ;;  %p1947_p4 = por %p147_p2, %p70_p1 }
  0x1f   : > { %2511 = sst [smem:[#allocation29_spill]] %s1813_s13  ;;  %p2458_p5 = scmp.lt.s32.totalorder %s1821_s15, 8 }
  0x20   : > { %2512 = sst [smem:[#allocation30_spill]] %s1821_s15  ;;  %s1953_s20 = sand.u32 1, %s1801_s10  }
  0x21   : > { %s2513_s19 = scalar_select %p1947_p4, 1, 0 }
  0x22   : > { %s2455_s21 = sshll.u32 %s1817_s14, 6  ;;  %s2456_s22 = sshll.u32 %s1953_s20, 2 }
  0x23   : > { %p1959_p6 = pnand %p2458_p5, %p71_p3  ;;  %s1964_s24 = sand.u32 1, %s1821_s15  }
  0x24   : > { %s2516_s1 = sld [smem:[#allocation39_spill]]  ;;  %s338_s18 = scalar_lea.vmem [#allocation6], %s2456_s22 }
  0x25   : > { %s2514_s23 = scalar_select %p1959_p6, 1, 0 }
  0x26   : > { %s345_s16 = sshll.u32 %s338_s18, 4  ;;  %p1982_p8 = pneg %p1959_p6  ;;  %s1975_s16 = int_to_ptr.vmem [resolvable:$true] %s345_s16 }
  0x27   : > { %2515 = sst [smem:[#allocation31_spill]] %s2514_s23 }
  0x28   : > { %s2517_s11 = scalar_select %p1982_p8, 1, 0 }
  0x2a   : > { %s1971_s17 = scalar_lea.hbm %s2516_s1, %s2455_s21  ;;  %s1450_s21 = scalar_lea.hbm %s2516_s1, 128 }
  0x2b   : > { %s1445_s12 = scalar_lea.hbm %s1971_s17, 64  ;;  %p1451_p11 = scmp.lt.u32.totalorder %s1971_s17, %s2516_s1 }
  0x2c   : > { %p1446_p7 = scmp.ne.s32.totalorder %s1971_s17, %s1445_s12  ;;  %p1452_p12 = scmp.lt.u32.totalorder %s1450_s21, %s1445_s12 }
  0x2d   : > { %p1454_p1 = scmp.lt.u32.totalorder %s1445_s12, %s1971_s17 }
  0x2e   : > { %p1448_p9 = pnand %p1982_p8, %p1446_p7  ;;  %p1453_p13 = por %p1452_p12, %p1451_p11 }
  0x30   : > { %p1449_p10 = pneg %p1448_p9  ;;  %p1455_p2 = por %p1454_p1, %p1453_p13 }
  0x32   : > { %p1456_p3 = pnand %p1455_p2, %p1449_p10 }
  0x34   : > { %1459 = shalt.err (!%p1456_p3)
}
  0x35   : > { %s1460_s8 = scalar_lea.vmem %s1975_s16, 64  ;;  %s1823_s25 = smov [#allocation6]  }
  0x36   : > { %p1461_p7 = scmp.ne.s32.totalorder %s1975_s16, %s1460_s8  ;;  %s1465_s26 = sshll.u32 %s1823_s25, 4  ;;  %s1466_s26 = int_to_ptr.vmem [resolvable:$false] %s1465_s26 }
  0x37   : > { %s1467_s22 = scalar_lea.vmem %s1466_s26, 128  ;;  %p1468_p5 = scmp.lt.s32.totalorder %s1975_s16, %s1466_s26 }
  0x38   : > { %p1463_p9 = pnand %p1461_p7, %p1982_p8  ;;  %p1469_p4 = scmp.lt.s32.totalorder %s1467_s22, %s1460_s8 }
  0x3a   : > { %p1464_p0 = pneg %p1463_p9  ;;  %p1470_p11 = por %p1469_p4, %p1468_p5 }
  0x3c   : > { %p1471_p12 = pnand %p1470_p11, %p1464_p0 }
  0x3e   : > { %1474 = shalt.err (!%p1471_p12)
}
  0x3f   : > { %s2518_s12 = scalar_lea.sflag [#allocation7], %s1964_s24  ;;  %p2519_p10 = scmp.ne.s32.totalorder %s2513_s19, 0 }
  0x40   : > { %1318 = dma.hbm_to_vmem [thread:$0]  (!%p1959_p6), %s1971_s17, 64, %s1975_s16, %s2518_s12  }
  0x41   : > { %p2520_p4 = scmp.lt.s32.totalorder %s1821_s15, 8  ;;  %s2459_s21 = sand.u32 1, %s1789_s29  }
  0x42   : > { %s46_s18 = sadd.s32 1, %s1813_s13  ;;  %s2019_s25 = sshll.u32 %s2459_s21, 4 }
  0x43   : > { %p2011_p0 = pnand %p2520_p4, %p2519_p10  ;;  %p47_p5 = scmp.ge.s32.totalorder %s46_s18, 4 }
  0x44   : > { %s2022_s26 = sshll.u32 %s1813_s13, 8  ;;  %s373_s16 = scalar_lea.vmem [#allocation9], %s2019_s25 }
  0x45   : > { %s2521_s8 = scalar_select %p2011_p0, 1, 0 }
  0x46   : > { %s380_s17 = sshll.u32 %s373_s16, 4  ;;  %s2599_s18 = smov (%p47_p5, %s46_s18), 0  ;;  %s2038_s17 = int_to_ptr.vmem [resolvable:$true] %s380_s17 }
  0x47   : > { %2522 = sst [smem:[#allocation32_spill]] %s2599_s18  ;;  %s2523_s19 = sadd.s32 1, %s1817_s14 }
  0x48   : > { %s2601_s19 = smov (!%p47_p5, %s2523_s19), %s1817_s14  ;;  %s137_s22 = ssub.s32 %s1813_s13, %s2599_s18 }
  0x49   : > { %s2524_s3 = sld [smem:[#allocation41_spill]]  ;;  %p55_p13 = scmp.ge.s32.totalorder %s2601_s19, 2 }
  0x4a   : > { %p138_p1 = scmp.eq.s32.totalorder %s137_s22, 0  ;;  %s2526_s16 = sadd.s32 1, %s1789_s29 }
  0x4b   : > { %s2603_s19 = smov (%p55_p13, %s2601_s19), 0  ;;  %p2058_p7 = pneg %p2011_p0 }
  0x4c   : > { %2525 = sst [smem:[#allocation33_spill]] %s2603_s19  ;;  %s57_s18 = ssub.s32 %s1817_s14, %s2603_s19 }
  0x4d   : > { %s2045_s6 = scalar_select %p138_p1, %s1789_s29, %s2526_s16  }
  0x4e   : > { %p2049_p2 = scmp.eq.s32.totalorder %s57_s18, 0 }
  0x4f   : > { %s2036_s21 = scalar_lea.hbm %s2524_s3, %s2022_s26  ;;  %2527 = sst [smem:[#allocation34_spill]] %s2045_s6 }
  0x50   : > { %s2528_s13 = scalar_select %p2049_p2, 1, 0 }
  0x51   : > { %s1475_s12 = scalar_lea.hbm %s2036_s21, 256  ;;  %s1480_s19 = scalar_lea.hbm %s2524_s3, 1024 }
  0x52   : > { %p1476_p3 = scmp.ne.s32.totalorder %s2036_s21, %s1475_s12  ;;  %p1481_p12 = scmp.lt.u32.totalorder %s2036_s21, %s2524_s3 }
  0x53   : > { %s2529_s22 = scalar_select %p2058_p7, 1, 0 }
  0x54   : > { %p1478_p9 = pnand %p2058_p7, %p1476_p3  ;;  %p1482_p10 = scmp.lt.u32.totalorder %s1480_s19, %s1475_s12 }
  0x55   : > { %p1484_p5 = scmp.lt.u32.totalorder %s1475_s12, %s2036_s21 }
  0x56   : > { %p1479_p11 = pneg %p1478_p9  ;;  %p1483_p4 = por %p1482_p10, %p1481_p12 }
  0x58   : > { %p1485_p13 = por %p1484_p5, %p1483_p4 }
  0x5a   : > { %p1486_p1 = pnand %p1485_p13, %p1479_p11 }
  0x5c   : > { %1489 = shalt.err (!%p1486_p1)
}
  0x5d   : > { %s1490_s1 = scalar_lea.vmem %s2038_s17, 256  ;;  %s1824_s4 = smov [#allocation9]  }
  0x5e   : > { %p1491_p3 = scmp.ne.s32.totalorder %s2038_s17, %s1490_s1  ;;  %s1495_s16 = sshll.u32 %s1824_s4, 4  ;;  %s1496_s16 = int_to_ptr.vmem [resolvable:$false] %s1495_s16 }
  0x5f   : > { %s1497_s6 = scalar_lea.vmem %s1496_s16, 512  ;;  %p1498_p8 = scmp.lt.s32.totalorder %s2038_s17, %s1496_s16 }
  0x60   : > { %p1493_p9 = pnand %p1491_p3, %p2058_p7  ;;  %p1499_p2 = scmp.lt.s32.totalorder %s1497_s6, %s1490_s1 }
  0x62   : > { %p1494_p6 = pneg %p1493_p9  ;;  %p1500_p12 = por %p1499_p2, %p1498_p8 }
  0x64   : > { %p1501_p10 = pnand %p1500_p12, %p1494_p6 }
  0x66   : > { %1504 = shalt.err (!%p1501_p10)
}
  0x67   : > { %s2477_s19 = smov 64   ;;  %s2478_s12 = smov 4  }
  0x68   : > { %s2530_s1 = scalar_lea.sflag [#allocation10], %s1964_s24  ;;  %s2531_s18 = sadd.s32 1, %s1801_s10 }
  0x69   : > { %1324 = dma.hbm_to_vmem [thread:$0]  (!%p2011_p0), %s2036_s21, 256, %s2038_s17, %s2530_s1, %s2477_s19, %s2477_s19, %s2478_s12  }
  0x6a   : > { %p2532_p6 = scmp.ne.s32.totalorder %s2528_s13, 0  ;;  %s2534_s5 = sld [smem:[#allocation43_spill]] }
  0x6b   : > { %s415_s29 = scalar_lea.vmem [#allocation12], %s2019_s25  ;;  %s2476_s7 = scalar_lea.sflag [#allocation13], %s1964_s24 }
  0x6c   : > { %s2091_s4 = scalar_select %p2532_p6, %s1801_s10, %s2531_s18  }
  0x6d   : > { %s422_s2 = sshll.u32 %s415_s29, 4  ;;  %s2100_s2 = int_to_ptr.vmem [resolvable:$true] %s422_s2 }
  0x6e   : > { %2533 = sst [smem:[#allocation35_spill]] %s2091_s4 }
  0x70   : > { %s2097_s3 = scalar_lea.hbm %s2534_s5, %s2022_s26  ;;  %s1510_s17 = scalar_lea.hbm %s2534_s5, 1024 }
  0x71   : > { %s1505_s23 = scalar_lea.hbm %s2097_s3, 256  ;;  %p1511_p4 = scmp.lt.u32.totalorder %s2097_s3, %s2534_s5 }
  0x72   : > { %p1506_p8 = scmp.ne.s32.totalorder %s2097_s3, %s1505_s23  ;;  %p1512_p5 = scmp.lt.u32.totalorder %s1510_s17, %s1505_s23 }
  0x73   : > { %p1514_p1 = scmp.lt.u32.totalorder %s1505_s23, %s2097_s3 }
  0x74   : > { %p1508_p2 = pnand %p1506_p8, %p2058_p7  ;;  %p1513_p13 = por %p1512_p5, %p1511_p4 }
  0x76   : > { %p1509_p11 = pneg %p1508_p2  ;;  %p1515_p3 = por %p1514_p1, %p1513_p13 }
  0x78   : > { %p1516_p9 = pnand %p1515_p3, %p1509_p11 }
  0x7a   : > { %1519 = shalt.err (!%p1516_p9)
}
  0x7b   : > { %s1520_s29 = scalar_lea.vmem %s2100_s2, 256  ;;  %s1827_s16 = smov [#allocation12]  }
  0x7c   : > { %p1521_p12 = scmp.ne.s32.totalorder %s2100_s2, %s1520_s29  ;;  %s1525_s6 = sshll.u32 %s1827_s16, 4  ;;  %s1526_s6 = int_to_ptr.vmem [resolvable:$false] %s1525_s6 }
  0x7d   : > { %s1527_s13 = scalar_lea.vmem %s1526_s6, 512  ;;  %p1528_p8 = scmp.lt.s32.totalorder %s2100_s2, %s1526_s6 }
  0x7e   : > { %p1523_p10 = pnand %p1521_p12, %p2058_p7  ;;  %p1529_p2 = scmp.lt.s32.totalorder %s1527_s13, %s1520_s29 }
  0x80   : > { %p1524_p6 = pneg %p1523_p10  ;;  %p1530_p4 = por %p1529_p2, %p1528_p8 }
  0x82   : > { %p1531_p5 = pnand %p1530_p4, %p1524_p6 }
  0x84   : > { %1534 = shalt.err (!%p1531_p5)
}
  0x85   : > { %1330 = dma.hbm_to_vmem [thread:$0]  (!%p2011_p0), %s2097_s3, 256, %s2100_s2, %s2476_s7, %s2477_s19, %s2477_s19, %s2478_s12  }
  0x86   : > { %s2130_s23 = sadd.s32 4294967295, %s1821_s15   ;;  %s1179_s21 = sadd.s32 4294967294, %s1821_s15  }
  0x87   : > { %p75_p11 = scmp.ne.s32.totalorder %s1797_s9, %s1793_s30  ;;  %p2481_p13 = scmp.eq.s32.totalorder %s2130_s23, 0 }
  0x88   : > { %p153_p1 = scmp.ne.s32.totalorder %s1785_s28, %s1781_s27  ;;  %p278_p3 = scmp.eq.s32.totalorder %s2130_s23, 7 }
  0x89   : > { %p284_p9 = scmp.eq.s32.totalorder %s1179_s21, 7  ;;  %p2141_p12 = por %p2481_p13, %p75_p11 }
  0x8a   : > { %p2147_p10 = por %p153_p1, %p2481_p13  ;;  %p2537_p6 = scmp.ne.s32.totalorder %s1801_s10, %s1797_s9 }
  0x8b   : > { %s2535_s17 = scalar_select %p2141_p12, 1, 0 }
  0x8c   : > { %s2536_s2 = scalar_select %p2147_p10, 1, 0 }
  0x8d   : > { %p2154_p8 = por %p278_p3, %p2537_p6  ;;  %p2158_p2 = por %p284_p9, %p75_p11 }
  0x8e   : > { %p1180_p4 = scmp.ge.s32.totalorder %s1821_s15, 1  ;;  %p291_p5 = scmp.lt.s32.totalorder %s1821_s15, 9 }
  0x8f   : > { %s2538_s3 = scalar_select %p2154_p8, 1, 0 }
  0x90   : > { %s2540_s27 = scalar_select %p2158_p2, 1, 0 }
  0x91   : > { %2539 = sst [smem:[#allocation36_spill]] %s2538_s3  ;;  %p2164_p0 = pnand %p1180_p4, %p291_p5 }
  0x92   : > { %2541 = sst [smem:[#allocation37_spill]] %s2540_s27  ;;  %s1828_s18 = smov [#allocation15]  }
  0x93   : > { %s2542_s1 = scalar_select %p2164_p0, 1, 0 }
  0x94   : > { %s304_s29 = sshll.u32 %s1828_s18, 4  ;;  %p1308_p1 = pneg %p2164_p0  ;;  %s2168_s29 = int_to_ptr.vmem [resolvable:$true] %s304_s29 }
  0x95   : > { %s2543_s16 = sshll.u32 %s1817_s14, 6  ;;  %s2544_s0 = sld [smem:[#allocation38_spill]] }
  0x96   : > { %s2545_s7 = sshll.u32 %s1953_s20, 2  ;;  %p2183_p11 = pnand %p1308_p1, %p2481_p13 }
  0x97   : > { %s319_s19 = scalar_lea.vmem [#allocation3], %s2545_s7  ;;  %s316_s5 = scalar_lea.sflag [#allocation4], %s1953_s20 }
  0x98   : > { %s327_s12 = sshll.u32 %s319_s19, 4  ;;  %p2547_p9 = scmp.ne.s32.totalorder %s2517_s11, 0  ;;  %s328_s12 = int_to_ptr.vmem [resolvable:$true] %s327_s12 }
  0x99   : > { %s2546_s18 = scalar_select %p2183_p11, 1, 0 }
  0x9b   : > { %s2177_s21 = scalar_lea.hbm %s2544_s0, %s2543_s16  ;;  %s1540_s13 = scalar_lea.hbm %s2544_s0, 128 }
  0x9c   : > { %s1535_s4 = scalar_lea.hbm %s2177_s21, 64  ;;  %p1541_p5 = scmp.lt.u32.totalorder %s2177_s21, %s2544_s0 }
  0x9d   : > { %p1536_p3 = scmp.ne.s32.totalorder %s2177_s21, %s1535_s4  ;;  %p1542_p2 = scmp.lt.u32.totalorder %s1540_s13, %s1535_s4 }
  0x9e   : > { %p1544_p13 = scmp.lt.u32.totalorder %s1535_s4, %s2177_s21 }
  0x9f   : > { %p1538_p6 = pnand %p1536_p3, %p2547_p9  ;;  %p1543_p1 = por %p1542_p2, %p1541_p5 }
  0xa1   : > { %p1539_p4 = pneg %p1538_p6  ;;  %p1545_p8 = por %p1544_p13, %p1543_p1 }
  0xa3   : > { %p1546_p10 = pnand %p1545_p8, %p1539_p4 }
  0xa5   : > { %1549 = shalt.err (!%p1546_p10)
}
  0xa6   : > { %s1550_s7 = scalar_lea.vmem %s328_s12, 64  ;;  %s1829_s19 = smov [#allocation3]  }
  0xa7   : > { %p1551_p12 = scmp.ne.s32.totalorder %s328_s12, %s1550_s7  ;;  %s1555_s30 = sshll.u32 %s1829_s19, 4  ;;  %s1556_s30 = int_to_ptr.vmem [resolvable:$false] %s1555_s30 }
  0xa8   : > { %s1557_s16 = scalar_lea.vmem %s1556_s30, 128  ;;  %p1558_p0 = scmp.lt.s32.totalorder %s328_s12, %s1556_s30 }
  0xa9   : > { %p1553_p3 = pnand %p1551_p12, %p2547_p9  ;;  %p1559_p7 = scmp.lt.s32.totalorder %s1557_s16, %s1550_s7 }
  0xab   : > { %p1554_p6 = pneg %p1553_p3  ;;  %p1560_p11 = por %p1559_p7, %p1558_p0 }
  0xad   : > { %p1561_p2 = pnand %p1560_p11, %p1554_p6 }
  0xaf   : > { %1564 = shalt.err (!%p1561_p2)
}
  0xb0   : > { %s2548_s10 = sld [smem:[#allocation31_spill]]  ;;  %s2550_s6 = sld [smem:[#allocation45_spill]] }
  0xb1   : > { %p2551_p12 = scmp.ne.s32.totalorder %s2546_s18, 0 }
  0xb3   : > { %p1567_p10 = pneg %p2551_p12 }
  0xb6   : > { %p2549_p5 = scmp.ne.s32.totalorder %s2548_s10, 0  ;;  %s1565_s13 = scalar_lea.hbm %s2550_s6, 16 }
  0xb7   : > { %p1566_p13 = scmp.ne.s32.totalorder %s2550_s6, %s1565_s13  ;;  %p1572_p0 = scmp.lt.u32.totalorder %s1565_s13, %s2550_s6 }
  0xb8   : > { %1315 = dma.hbm_to_vmem [thread:$0]  (!%p2549_p5), %s2177_s21, 64, %s328_s12, %s316_s5  }
  0xb9   : > { %p1568_p8 = pnand %p1567_p10, %p1566_p13 }
  0xbb   : > { %p1569_p4 = pneg %p1568_p8 }
  0xbd   : > { %p1574_p7 = pnand %p1572_p0, %p1569_p4 }
  0xbf   : > { %1577 = shalt.err (!%p1574_p7)
}
  0xc0   : > { %s1578_s5 = scalar_lea.vmem %s2168_s29, 16  ;;  %s1585_s0 = scalar_lea.vmem %s2168_s29, 32 }
  0xc1   : > { %p1579_p11 = scmp.ne.s32.totalorder %s2168_s29, %s1578_s5  ;;  %p1586_p6 = scmp.lt.s32.totalorder %s2168_s29, %s2168_s29 }
  0xc2   : > { %p1587_p2 = scmp.lt.s32.totalorder %s1585_s0, %s1578_s5 }
  0xc3   : > { %p1581_p1 = pnand %p1579_p11, %p1567_p10 }
  0xc4   : > { %p1588_p13 = por %p1587_p2, %p1586_p6 }
  0xc5   : > { %p1582_p3 = pneg %p1581_p1 }
  0xc7   : > { %p1589_p8 = pnand %p1588_p13, %p1582_p3 }
  0xc9   : > { %1592 = shalt.err (!%p1589_p8)
}
  0xca   : > { %1311 = dma.hbm_to_vmem [thread:$0]  (!%p2551_p12), %s2550_s6, 16, %s2168_s29, [#allocation16]  }
  0xcb   : > { %s1187_s21 = sshll.u32 %s1817_s14, 4  ;;  %s355_s19 = scalar_lea.vmem [#allocation8], %s1953_s20 }
  0xcc   : > { %s362_s16 = sshll.u32 %s355_s19, 4  ;;  %s2552_s13 = sld [smem:[#allocation40_spill]]  ;;  %s363_s16 = int_to_ptr.vmem [resolvable:$true] %s362_s16 }
  0xd2   : > { %s2553_s7 = smov %s2552_s13  ;;  %s360_s30 = scalar_lea.hbm %s2552_s13, %s1187_s21 }
  0xd3   : > { %s1593_s5 = scalar_lea.hbm %s360_s30, 16  ;;  %s1598_s15 = scalar_lea.hbm %s2553_s7, 32 }
  0xd4   : > { %p1594_p10 = scmp.ne.s32.totalorder %s360_s30, %s1593_s5  ;;  %p1599_p12 = scmp.lt.u32.totalorder %s360_s30, %s2553_s7 }
  0xd5   : > { %p1600_p7 = scmp.lt.u32.totalorder %s1598_s15, %s1593_s5  ;;  %p1602_p1 = scmp.lt.u32.totalorder %s1593_s5, %s360_s30 }
  0xd6   : > { %p1596_p4 = pnand %p1594_p10, %p2547_p9 }
  0xd7   : > { %p1601_p11 = por %p1600_p7, %p1599_p12 }
  0xd8   : > { %p1597_p0 = pneg %p1596_p4 }
  0xd9   : > { %p1603_p3 = por %p1602_p1, %p1601_p11 }
  0xdb   : > { %p1604_p6 = pnand %p1603_p3, %p1597_p0 }
  0xdd   : > { %1607 = shalt.err (!%p1604_p6)
}
  0xde   : > { %s1608_s20 = scalar_lea.vmem %s363_s16, 16  ;;  %s1830_s29 = smov [#allocation8]  }
  0xdf   : > { %p1609_p2 = scmp.ne.s32.totalorder %s363_s16, %s1608_s20  ;;  %s1613_s21 = sshll.u32 %s1830_s29, 4  ;;  %s1614_s21 = int_to_ptr.vmem [resolvable:$false] %s1613_s21 }
  0xe0   : > { %s1615_s19 = scalar_lea.vmem %s1614_s21, 32  ;;  %p1616_p10 = scmp.lt.s32.totalorder %s363_s16, %s1614_s21 }
  0xe1   : > { %p1611_p13 = pnand %p1609_p2, %p2547_p9  ;;  %p1617_p4 = scmp.lt.s32.totalorder %s1615_s19, %s1608_s20 }
  0xe3   : > { %p1612_p8 = pneg %p1611_p13  ;;  %p1618_p5 = por %p1617_p4, %p1616_p10 }
  0xe5   : > { %p1619_p7 = pnand %p1618_p5, %p1612_p8 }
  0xe7   : > { %1622 = shalt.err (!%p1619_p7)
}
  0xe8   : > { %p2554_p12 = scmp.ne.s32.totalorder %s2548_s10, 0  ;;  %s2555_s3 = scalar_lea.sflag [#allocation7], %s1964_s24 }
  0xe9   : > { %s2556_s4 = sld [smem:[#allocation24_spill]]  ;;  %s2557_s13 = sld [smem:[#allocation42_spill]] }
  0xea   : > { %1321 = dma.hbm_to_vmem [thread:$0]  (!%p2554_p12), %s360_s30, 16, %s363_s16, %s2555_s3  }
  0xeb   : > { %s394_s0 = scalar_lea.vmem [#allocation11], %s2019_s25  ;;  %p2560_p5 = scmp.ne.s32.totalorder %s2529_s22, 0 }
  0xec   : > { %s401_s15 = sshll.u32 %s394_s0, 4  ;;  %s2257_s15 = int_to_ptr.vmem [resolvable:$true] %s401_s15 }
  0xef   : > { %s2558_s5 = smov %s2557_s13  ;;  %s2250_s18 = scalar_lea.hbm %s2557_s13, %s2022_s26 }
  0xf0   : > { %s2559_s12 = sand.u32 1, %s2556_s4   ;;  %s1623_s20 = scalar_lea.hbm %s2250_s18, 256 }
  0xf1   : > { %s2255_s10 = sshll.u32 %s2559_s12, 2  ;;  %p1624_p9 = scmp.ne.s32.totalorder %s2250_s18, %s1623_s20 }
  0xf2   : > { %s1628_s26 = scalar_lea.hbm %s2558_s5, 1024  ;;  %p1629_p1 = scmp.lt.u32.totalorder %s2250_s18, %s2558_s5 }
  0xf3   : > { %p1626_p0 = pnand %p1624_p9, %p2560_p5  ;;  %p1630_p3 = scmp.lt.u32.totalorder %s1628_s26, %s1623_s20 }
  0xf4   : > { %p1632_p2 = scmp.lt.u32.totalorder %s1623_s20, %s2250_s18 }
  0xf5   : > { %p1627_p11 = pneg %p1626_p0  ;;  %p1631_p6 = por %p1630_p3, %p1629_p1 }
  0xf7   : > { %p1633_p13 = por %p1632_p2, %p1631_p6 }
  0xf9   : > { %p1634_p8 = pnand %p1633_p13, %p1627_p11 }
  0xfb   : > { %1637 = shalt.err (!%p1634_p8)
}
  0xfc   : > { %s1638_s25 = scalar_lea.vmem %s2257_s15, 256  ;;  %s1831_s19 = smov [#allocation11]  }
  0xfd   : > { %p1639_p10 = scmp.ne.s32.totalorder %s2257_s15, %s1638_s25  ;;  %s1643_s3 = sshll.u32 %s1831_s19, 4  ;;  %s1644_s3 = int_to_ptr.vmem [resolvable:$false] %s1643_s3 }
  0xfe   : > { %s1645_s4 = scalar_lea.vmem %s1644_s3, 512  ;;  %p1646_p12 = scmp.lt.s32.totalorder %s2257_s15, %s1644_s3 }
  0xff   : > { %p1641_p4 = pnand %p1639_p10, %p2560_p5  ;;  %p1647_p9 = scmp.lt.s32.totalorder %s1645_s4, %s1638_s25 }
 0x101   : > { %p1642_p7 = pneg %p1641_p4  ;;  %p1648_p0 = por %p1647_p9, %p1646_p12 }
 0x103   : > { %p1649_p1 = pnand %p1648_p0, %p1642_p7 }
 0x105   : > { %1652 = shalt.err (!%p1649_p1)
}
 0x106   : > { %p2561_p11 = scmp.ne.s32.totalorder %s2521_s8, 0  ;;  %s2562_s11 = smov 4  }
 0x107   : > { %s2563_s27 = smov 64   ;;  %s2564_s13 = scalar_lea.sflag [#allocation10], %s1964_s24 }
 0x108   : > { %s2565_s0 = sld [smem:[#allocation29_spill]]  ;;  %s436_s20 = scalar_lea.vmem [#allocation14], %s2255_s10 }
 0x109   : > { %1327 = dma.hbm_to_vmem [thread:$0]  (!%p2561_p11), %s2250_s18, 256, %s2257_s15, %s2564_s13, %s2563_s27, %s2563_s27, %s2562_s11  }
 0x10a   : > { %s443_s16 = sshll.u32 %s436_s20, 4  ;;  %s2566_s29 = sld [smem:[#allocation44_spill]]  ;;  %s444_s16 = int_to_ptr.vmem [resolvable:$true] %s443_s16 }
 0x10e   : > { %s1198_s12 = sshll.u32 %s2565_s0, 6 }
 0x110   : > { %s2567_s21 = smov %s2566_s29  ;;  %s441_s25 = scalar_lea.hbm %s2566_s29, %s1198_s12 }
 0x111   : > { %s1653_s19 = scalar_lea.hbm %s441_s25, 64  ;;  %s1658_s5 = scalar_lea.hbm %s2567_s21, 256 }
 0x112   : > { %p1654_p3 = scmp.ne.s32.totalorder %s441_s25, %s1653_s19  ;;  %p1659_p13 = scmp.lt.u32.totalorder %s441_s25, %s2567_s21 }
 0x113   : > { %p1660_p8 = scmp.lt.u32.totalorder %s1658_s5, %s1653_s19  ;;  %p1662_p4 = scmp.lt.u32.totalorder %s1653_s19, %s441_s25 }
 0x114   : > { %p1656_p6 = pnand %p1654_p3, %p2560_p5 }
 0x115   : > { %p1661_p10 = por %p1660_p8, %p1659_p13 }
 0x116   : > { %p1657_p2 = pneg %p1656_p6 }
 0x117   : > { %p1663_p7 = por %p1662_p4, %p1661_p10 }
 0x119   : > { %p1664_p12 = pnand %p1663_p7, %p1657_p2 }
 0x11b   : > { %1667 = shalt.err (!%p1664_p12)
}
 0x11c   : > { %s1668_s18 = scalar_lea.vmem %s444_s16, 64  ;;  %s1832_s15 = smov [#allocation14]  }
 0x11d   : > { %p1669_p9 = scmp.ne.s32.totalorder %s444_s16, %s1668_s18  ;;  %s1673_s10 = sshll.u32 %s1832_s15, 4  ;;  %s1674_s10 = int_to_ptr.vmem [resolvable:$false] %s1673_s10 }
 0x11e   : > { %s1675_s11 = scalar_lea.vmem %s1674_s10, 128  ;;  %p1676_p3 = scmp.lt.s32.totalorder %s444_s16, %s1674_s10 }
 0x11f   : > { %p1671_p0 = pnand %p1669_p9, %p2560_p5  ;;  %p1677_p6 = scmp.lt.s32.totalorder %s1675_s11, %s1668_s18 }
 0x121   : > { %p1672_p1 = pneg %p1671_p0  ;;  %p1678_p11 = por %p1677_p6, %p1676_p3 }
 0x123   : > { %p1679_p8 = pnand %p1678_p11, %p1672_p1 }
 0x125   : > { %1682 = shalt.err (!%p1679_p8)
}
 0x126   : > { %p2568_p13 = scmp.ne.s32.totalorder %s2521_s8, 0  ;;  %s2569_s6 = scalar_lea.sflag [#allocation13], %s1964_s24 }
 0x127   : > { %p2570_p2 = scmp.ne.s32.totalorder %s2542_s1, 0 }
 0x128   : > { %1333 = dma.hbm_to_vmem [thread:$0]  (!%p2568_p13), %s441_s25, 64, %s444_s16, %s2569_s6  }
 0x129   : > { %452 = sbr.rel (%p2570_p2) target bundleno = 1559 (0x617), region = 52  ;;  %s2307_s22 = sand.u32 (!%p2570_p2), 1, %s1797_s9  }
 0x12a   : > { %s1200_s7 = sshll.u32 (!%p2570_p2), %s2307_s22, 2  ;;  %s455_s5 = scalar_lea.sflag (!%p2570_p2), [#allocation4], %s2307_s22 }
 0x12b   : > { %s2311_s27 = scalar_lea.vmem (!%p2570_p2), [#allocation3], %s1200_s7  ;;  %p2571_p5 = scmp.ne.s32.totalorder (!%p2570_p2), %s2535_s17, 0 }
 0x130   : > { %1756 = dma.done.wait (%p2571_p5), %s455_s5, 64  }
 0x131   : > { %1758 = vsyncadd (%p2571_p5), %s455_s5, 4294967232  ;;  %s463_s24 = sand.u32 1, %s2130_s23   ;;  %s2318_s1 = scalar_lea.vmem [#allocation6], %s1200_s7 }
 0x132   : > { %s464_s8 = scalar_lea.sflag [#allocation7], %s463_s24 }
 0x133   : > { %1760 = dma.done.wait (%p2571_p5), %s464_s8, 80  }
 0x134   : > { %1762 = vsyncadd (%p2571_p5), %s464_s8, 4294967216  ;;  %s482_s13 = sand.u32 1, %s1785_s28   ;;  %s475_s12 = scalar_lea.vmem [#allocation8], %s2307_s22 }
 0x135   : > { %s2325_s0 = sshll.u32 %s482_s13, 4  ;;  %s481_s20 = scalar_lea.sflag [#allocation10], %s463_s24 }
 0x136   : > { %s484_s16 = scalar_lea.vmem [#allocation9], %s2325_s0  ;;  %p2572_p11 = scmp.ne.s32.totalorder %s2536_s2, 0 }
 0x138   : > { %1764 = dma.done.wait (%p2572_p11), %s481_s20, 512  }
 0x139   : > { %1766 = vsyncadd (%p2572_p11), %s481_s20, 4294966784  ;;  %s493_s17 = scalar_lea.vmem [#allocation11], %s2325_s0  ;;  %s499_s30 = scalar_lea.sflag [#allocation13], %s463_s24 }
 0x13a   : > { %s502_s26 = scalar_lea.vmem [#allocation12], %s2325_s0 }
 0x13b   : > { %1768 = dma.done.wait (%p2572_p11), %s499_s30, 320  }
 0x13c   : > { %1770 = vsyncadd (%p2572_p11), %s499_s30, 4294966976  ;;  %s2339_s29 = sshll.u32 %s482_s13, 2  ;;  %p2573_p10 = scmp.eq.s32.totalorder %s2130_s23, 0 }
 0x13d   : > { %s511_s25 = scalar_lea.vmem [#allocation14], %s2339_s29 }
 0x13e   : > { %1772 = dma.done.wait (%p2573_p10), [#allocation16], 16   ;;  %p2574_p4 = pmov %p2573_p10 }
 0x13f   : > { %s1207_s19 = sshll.u32 %s2307_s22, 3  ;;  %s2575_s4 = sld [smem:[#allocation27_spill]] }
 0x140   : > { %1774 = vsyncadd (%p2574_p4), [#allocation16], 4294967280  ;;  %s2347_s3 = scalar_lea.vmem [#allocation17], %s1207_s19 }
 0x145   : > { %p1208_p7 = scmp.ne.s32.totalorder %s2575_s4, 0 }
 0x146   : > { %v1209_v0 = vld [vmem:[#allocation15] ss:$0 sm:$0xff] (!%p1208_p7)  ;;  %vm589_vm0 = vcmask (!%p1208_p7), 261120  }
 0x147   : > { %581 = sbr.rel (%p1208_p7) target bundleno = 334 (0x14e), region = 88  ;;  %590 = vst.msk [vmem:[#allocation2] sm:$0xff] (!%p1208_p7), %vm589_vm0, %v1209_v0 }
 0x14e PF: > { %v1435_v1 = vld [vmem:[%s493_s17] sm:$0xff]   ;;  %v1833_v2 = vmov 0.0   ;;  %v1436_v3 = vld [vmem:[%s493_s17 + $0x8] sm:$0xff]   ;;  %vm1834_vm1 = vmmov 0   ;;  %vm619_vm2 = vcmask 261120   ;;  %vm778_vm3 = vcmask 64512  }
 0x14f   : > { %1254 = vmatprep.subr.bf16.mxu1 %v1833_v2  ;;  %1246 = vmatprep.subr.bf16.mxu0 %v1833_v2  ;;  %v1437_v4 = vld [vmem:[%s484_s16] sm:$0xff]   ;;  %v1438_v5 = vld [vmem:[%s484_s16 + $0x8] sm:$0xff]   ;;  %vm841_vm4 = vcmask 1043456   ;;  %s2576_s23 = sld [smem:[#allocation27_spill]] }
 0x150   : > { %1255 = vmatpush3.bf16.msra.mxu1 %v1435_v1  ;;  %1258 = vmatprep.mubr.msk.bf16.mxu1 %vm1834_vm1, %v1833_v2  ;;  %v592_v6 = vld [vmem:[%s2318_s1] sm:$0xf]  ;;  %v591_v7 = vld [vmem:[%s2311_s27] sm:$0xf]  ;;  %v1219_v21 = vld [vmem:[%s475_s12] ss:$0 sm:$0xff] }
 0x151   : > { %1256 = vmatprep.subr.bf16.mxu1 %v1833_v2  ;;  %1250 = vmatprep.mubr.msk.bf16.mxu0 %vm1834_vm1, %v1833_v2  ;;  %v1439_v19 = vld [vmem:[%s502_s26] sm:$0xff]   ;;  %v1440_v20 = vld [vmem:[%s502_s26 + $0x8] sm:$0xff]  }
 0x152   : > { %1247 = vmatpush3.bf16.msra.mxu0 %v1437_v4  ;;  %v606_v39 = vld [vmem:[%s511_s25] sm:$0xf] }
 0x153   : > { %1248 = vmatprep.subr.bf16.mxu0 %v1833_v2  ;;  %v891_v40 = vsel %vm841_vm4, %v606_v39, 0  ;;  %v885_v50 = vld [vmem:[#allocation2] sm:$0xff] }
 0x154   : > { %1257 = vmatpush3.bf16.msra.mxu1 %v1436_v3 }
 0x155   : > { %1270 = vmatprep.subr.bf16.mxu1 %v1833_v2  ;;  %p1223_p12 = scmp.ne.s32.totalorder %s2576_s23, 3 }
 0x156   : > { %1249 = vmatpush3.bf16.msra.mxu0 %v1438_v5 }
 0x157   : > { %1259 = vmatmul.mubr.msk.bf16.vlgmr.msra.gmra.mrb[0].mxu1 %vm619_vm2, %v592_v6  ;;  %1262 = vmatprep.subr.bf16.mxu0 %v1833_v2 }
 0x158   : > { %1272 = vmatprep.mubr.msk.bf16.mxu1 %vm1834_vm1, %v1833_v2 }
 0x159   : > { %1251 = vmatmul.mubr.msk.bf16.vlgmr.msra.gmra.mrb[0].mxu0 %vm619_vm2, %v591_v7 }
 0x15a   : > { %1266 = vmatprep.mubr.msk.bf16.mxu0 %vm1834_vm1, %v1833_v2  ;;  %1263 = vmatpush3.bf16.msra.mxu0 %v1439_v19 }
 0x15b   : > { %1264 = vmatprep.subr.bf16.mxu0 %v1833_v2 }
 0x15e   : > { %1265 = vmatpush3.bf16.msra.mxu0 %v1440_v20 }
 0x15f   : > { %1276 = vmatprep.subr.bf16.mxu0 %v1833_v2 }
 0x161   : > { %1267 = vmatmul.mubr.msk.bf16.vlgmr.msra.gmra.mrb[4].mxu0 %vm619_vm2, %v592_v6 }
 0x162   : > { %1278 = vmatprep.mubr.msk.bf16.mxu0 %vm1834_vm1, %v1833_v2 }
 0x22a   : > { %v712_v8 = vpop.f32.mrb[0].mxu1 }
 0x22b   : > { %v771_v9 = vpack.c.bf16 %v712_v8, %v712_v8  ;;  %v1260_v10 = vpop.f32.mrb[1].mxu1 }
 0x22c   : > { %v715_v11 = vpop.f32.mrb[2].mxu1  ;;  %v657_v12 = vpop.f32.mrb[0].mxu0 }
 0x22d   : > { %v783_v13 = vsel %vm778_vm3, %v771_v9, 0  ;;  %v1261_v14 = vpop.f32.mrb[3].mxu1  ;;  %v1252_v15 = vpop.f32.mrb[1].mxu0  ;;  %v770_v18 = vpack.c.bf16 %v657_v12, %v657_v12 }
 0x22e   : > { %1271 = vmatpush3.bf16.xpose.msra.mxu1 %v783_v13  ;;  %v660_v16 = vpop.f32.mrb[2].mxu0 }
 0x22f   : > { %v1253_v17 = vpop.f32.mrb[3].mxu0  ;;  %1282 = vmatprep.subr.bf16.mxu1 %v1833_v2 }
 0x234   : > { %v764_v33 = vpop.f32.mrb[4].mxu0 }
 0x235   : > { %1273 = vmatmul.mubr.msk.bf16.vlgmr.msra.gmra.mrb[4].mxu1 %vm778_vm3, %v770_v18  ;;  %v1268_v34 = vpop.f32.mrb[5].mxu0  ;;  %v837_v37 = vpack.c.bf16 %v764_v33, %v764_v33 }
 0x236   : > { %1284 = vmatprep.mubr.msk.bf16.mxu1 %vm1834_vm1, %v1833_v2  ;;  %v767_v35 = vpop.f32.mrb[6].mxu0  ;;  %1283 = vmatpush3.bf16.msra.mxu1 %v891_v40 }
 0x237   : > { %v1269_v36 = vpop.f32.mrb[7].mxu0  ;;  %v843_v38 = vsel %vm841_vm4, %v837_v37, 0 }
 0x238   : > { %1277 = vmatpush3.bf16.msra.mxu0 %v843_v38 }
 0x308   : > { %v819_v22 = vpop.f32.mrb[4].mxu1 }
 0x309   : > { %v820_v23 = vadd.f32 %v1219_v21, %v819_v22  ;;  %v1274_v24 = vpop.f32.mrb[5].mxu1 }
 0x30a   : > { %v822_v25 = vpop.f32.mrb[6].mxu1 }
 0x30b   : > { %v1275_v26 = vpop.f32.mrb[7].mxu1  ;;  %v825_v27 = vsel %vm778_vm3, %v820_v23, -inf }
 0x30c   : > { %826 = vmax.xlane.f32.xlu0 %v825_v27 }
 0x399   : > { %v827_v28 = vpop.xlane.xlu0 %826 }
 0x39a   : > { %v828_v29 = vsub.f32 %v820_v23, %v827_v28 }
 0x39c   : > { %v829_v30 = vmul.f32 1.442695, %v828_v29 }
 0x39e   : > { %1441 = vpow2.f32 %v829_v30 }
 0x3a8   : > { %v1442_v31 = vpop.eup %1441 }
 0x3a9   : > { %v831_v32 = vsel %vm778_vm3, %v1442_v31, 0.0 }
 0x3aa   : > { %832 = vadd.xlane.f32.xlu0 %v831_v32 }
 0x437   : > { %v833_v41 = vpop.xlane.xlu0 %832 }
 0x438   : > { %1443 = vrcp.f32 %v833_v41 }
 0x442   : > { %v1444_v42 = vpop.eup %1443 }
 0x443   : > { %v835_v43 = vmul.f32 %v1444_v42, %v1442_v31 }
 0x445   : > { %v836_v44 = vpack.c.bf16 %v835_v43, %v835_v43 }
 0x447   : > { %1279 = vmatmul.mubr.msk.bf16.vlgmr.msra.gmra.mrb[8].mxu0 %vm778_vm3, %v836_v44 }
 0x51a   : > { %v879_v45 = vpop.f32.mrb[8].mxu0 }
 0x51b   : > { %v886_v46 = vpack.c.bf16 %v879_v45, %v879_v45  ;;  %v1280_v47 = vpop.f32.mrb[9].mxu0 }
 0x51c   : > { %v882_v48 = vpop.f32.mrb[10].mxu0 }
 0x51d   : > { %v1281_v49 = vpop.f32.mrb[11].mxu0  ;;  %1285 = vmatmul.mubr.msk.bf16.vlgmr.msra.gmra.mrb[8].mxu1 %vm778_vm3, %v886_v46 }
 0x5ed   : > { %938 = sbr.rel (%p1223_p12) target bundleno = 1532 (0x5fc), region = 92 }
 0x5f0   : > { %v927_v51 = vpop.f32.mrb[8].mxu1 }
 0x5f1   : > { %v933_v52 = vadd.f32 %v927_v51, %v885_v50  ;;  %v1286_v53 = vpop.f32.mrb[9].mxu1 }
 0x5f2   : > { %v930_v54 = vpop.f32.mrb[10].mxu1 }
 0x5f3   : > { %934 = vst.msk [vmem:[#allocation2] sm:$0xff] %vm619_vm2, %v933_v52  ;;  %v1287_v55 = vpop.f32.mrb[11].mxu1 }
 0x5fa   : > { %v939_v56 = vld [vmem:[#allocation2] sm:$0xff] }
 0x5fb   : > { %940 = vst.msk [vmem:[%s2347_s3] sm:$0xff] %vm619_vm2, %v939_v56 }
 0x5fc PF: > { %s2577_s2 = sld [smem:[#allocation28_spill]]  ;;  %s2578_s18 = sld [smem:[#allocation36_spill]] }
 0x5fd   : > { %s2579_s6 = sld [smem:[#allocation46_spill]]  ;;  %s956_s5 = sshll.u32 %s2347_s3, 4  ;;  %s957_s5 = int_to_ptr.vmem [resolvable:$true] %s956_s5 }
 0x5fe   : > { %s942_s27 = scalar_lea.sflag [#allocation5], %s2307_s22  ;;  %s1683_s24 = scalar_lea.vmem %s957_s5, 128 }
 0x5ff   : > { %p1684_p9 = scmp.ne.s32.totalorder %s957_s5, %s1683_s24  ;;  %s1835_s8 = smov [#allocation17]  }
 0x600   : > { %s1687_s1 = sshll.u32 %s1835_s8, 4  ;;  %s1688_s1 = int_to_ptr.vmem [resolvable:$false] %s1687_s1 }
 0x601   : > { %s1689_s13 = scalar_lea.vmem %s1688_s1, 256  ;;  %p1690_p6 = scmp.lt.s32.totalorder %s957_s5, %s1688_s1 }
 0x602   : > { %s1225_s15 = sshll.u32 %s2577_s2, 7  ;;  %p2580_p0 = scmp.ne.s32.totalorder %s2578_s18, 0 }
 0x603   : > { %s2387_s7 = scalar_lea.hbm %s2579_s6, %s1225_s15  ;;  %p1691_p8 = scmp.lt.s32.totalorder %s1689_s13, %s1683_s24 }
 0x604   : > { %p1685_p1 = pnand %p1684_p9, %p2580_p0 }
 0x605   : > { %p1692_p13 = por %p1691_p8, %p1690_p6 }
 0x606   : > { %p1686_p3 = pneg %p1685_p1 }
 0x608   : > { %p1693_p2 = pnand %p1692_p13, %p1686_p3 }
 0x60a   : > { %1696 = shalt.err (!%p1693_p2)
}
 0x60b   : > { %s1697_s22 = scalar_lea.hbm %s2387_s7, 128  ;;  %s1701_s20 = scalar_lea.hbm %s2579_s6, 256 }
 0x60c   : > { %p1698_p5 = scmp.ne.s32.totalorder %s2387_s7, %s1697_s22  ;;  %p1702_p4 = scmp.lt.u32.totalorder %s2387_s7, %s2579_s6 }
 0x60d   : > { %p1703_p7 = scmp.lt.u32.totalorder %s1701_s20, %s1697_s22  ;;  %p1705_p9 = scmp.lt.u32.totalorder %s1697_s22, %s2387_s7 }
 0x60e   : > { %p1699_p11 = pnand %p1698_p5, %p2580_p0 }
 0x60f   : > { %p1704_p12 = por %p1703_p7, %p1702_p4 }
 0x610   : > { %p1700_p10 = pneg %p1699_p11 }
 0x611   : > { %p1706_p1 = por %p1705_p9, %p1704_p12 }
 0x613   : > { %p1707_p3 = pnand %p1706_p1, %p1700_p10 }
 0x615   : > { %1710 = shalt.err (!%p1707_p3)
}
 0x616   : > { %1306 = dma.vmem_to_hbm [thread:$0]  (%p2580_p0), %s957_s5, 128, %s2387_s7, %s942_s27  }
 0x617 PF: > { %s2581_s30 = sld [smem:[#allocation30_spill]]  ;;  %s2582_s26 = sld [smem:[#allocation25_spill]] }
 0x618   : > { %s2583_s29 = sld [smem:[#allocation37_spill]] }
 0x61d   : > { %p1341_p6 = scmp.ge.s32.totalorder %s2581_s30, 2  ;;  %s968_s25 = sand.u32 1, %s2582_s26  }
 0x61e   : > { %p2584_p8 = scmp.ne.s32.totalorder %s2583_s29, 0  ;;  %s969_s19 = scalar_lea.sflag [#allocation5], %s968_s25 }
 0x620   : > { %p1335_p13 = pnand %p1341_p6, %p2584_p8 }
 0x622   : > { %1776 = dma.done.wait (!%p1335_p13), %s969_s19, 128  }
 0x623   : > { %1778 = vsyncadd (!%p1335_p13), %s969_s19, 4294967168  ;;  %s34_s15 = sadd.s32 1, %s2581_s30   ;;  %s2585_s3 = sld [smem:[#allocation24_spill]] }
 0x624   : > { %p31_p2 = scmp.ge.s32.totalorder %s34_s15, 10   ;;  %s2586_s29 = sld [smem:[#allocation34_spill]] }
 0x625   : > { %s2587_s4 = sld [smem:[#allocation26_spill]]  ;;  %s2588_s10 = sld [smem:[#allocation35_spill]] }
 0x626   : > { %s2589_s11 = sld [smem:[#allocation29_spill]]  ;;  %s2590_s13 = sld [smem:[#allocation32_spill]] }
 0x627   : > { %s2591_s23 = sld [smem:[#allocation33_spill]]  ;;  %s2592_s27 = smov %s1785_s28 }
 0x628   : > { %s2594_s30 = smov %s1797_s9  ;;  %s2596_s12 = smov %s1817_s14 }
 0x629   : > { %s2593_s28 = smov %s2585_s3  ;;  %33 = sbr.rel (!%p31_p2) target bundleno = 26 (0x1a), region = 181 }
 0x62b   : > { %s2595_s9 = smov %s2587_s4 }
 0x62d   : > { %s2597_s14 = smov %s2591_s23 }
 0x630   :  { %974 = vsyncpa [#allocation4], 1 }
 0x631   :  { %976 = vsyncpa [#allocation4 + $0x1], 1 }
 0x632   :  { %977 = vsyncpa [#allocation7], 1 }
 0x633   :  { %979 = vsyncpa [#allocation7 + $0x1], 1 }
 0x634   :  { %980 = vsyncpa [#allocation10], 1 }
 0x635   :  { %982 = vsyncpa [#allocation10 + $0x1], 1 }
 0x636   :  { %983 = vsyncpa [#allocation13], 1 }
 0x637   :  { %985 = vsyncpa [#allocation13 + $0x1], 1 }
 0x638   :  { %986 = vsyncpa [#allocation16], 1 }
 0x639   :  { %987 = vsyncpa [#allocation5], 1 }
 0x63a   :  { %989 = vsyncpa [#allocation5 + $0x1], 1 }

</bundles_post_ra>
